<compile_context>
chip_gen: v5e
topology: v5e:2x2
jax: 0.10.0
libtpu: 0.0.40
codegen_flags: <defaults>
</compile_context>

<pallas_src>
import functools
import math

import jax
import jax.numpy as jnp
from jax.experimental import pallas as pl
from jax.experimental.pallas import tpu as pltpu


def _conv3x3_kernel(x_ref, w_ref, o_ref, *, img_w: int):
    """Fused single-matmul 3x3 VALID conv over a lane-flattened pixel block.

    x_ref: (1, Cin, L)        channels on sublanes, flattened pixels
                              (image-major) on lanes.
    w_ref: (Cout, 9*Cin + 1)  lane-dense fused weight; column t*Cin + c is
                              weight[o, c, kh, kw] with t = kh*3 + kw; the last
                              column is the bias.
    o_ref: (1, Cout, L)       lane-dense output over the full padded pixel
                              domain (invalid positions discarded by wrapper).
    """
    _, cin, L = x_ref.shape

    # clamp input to [0, 255]   (torch.clamp(input, 0, 255))
    x = jnp.clip(x_ref[0], 0.0, 255.0)                        # (Cin, L) f32

    # Output pixel p needs input pixel p + kh*W + kw: a pure shift along the
    # flattened lane axis. pltpu.roll by (L - s) == jnp.roll by -s and maps to
    # the XLU rotate. Wrapped lanes only affect invalid output positions.
    taps = []
    for kh in range(3):
        for kw in range(3):
            s = kh * img_w + kw
            taps.append(x if s == 0 else pltpu.roll(x, shift=L - s, axis=1))
    taps.append(jnp.ones((1, L), dtype=jnp.float32))          # bias row
    x_stack = jnp.concatenate(taps, axis=0)                   # (9*Cin+1, L)

    # Single MXU matmul, f32 accumulation; bias rides along as the last column.
    y = jnp.dot(w_ref[...], x_stack, preferred_element_type=jnp.float32)

    # floor + clamp to [0, 255]
    o_ref[0] = jnp.clip(jnp.floor(y), 0.0, 255.0).astype(o_ref.dtype)


def _tpu_parallel_blocks():
    """2 for megacore parts (v7x: 2 TensorCores/chip), else 1 (v5e/v6e)."""
    try:
        kind = jax.devices()[0].device_kind.lower()
    except Exception:
        return 1
    return 2 if ("v7" in kind or "tpu7" in kind) else 1


def conv2d_3x3_pallas(x_nchw, weight_oihw, bias, *, num_parallel_blocks=None):
    """x_nchw: (N, Cin, H, W) f32; weight: (Cout, Cin, 3, 3); bias: (Cout,)."""
    N, Cin, H, W = x_nchw.shape
    Cout = weight_oihw.shape[0]
    OH, OW = H - 2, W - 2
    HW = H * W

    if num_parallel_blocks is None:
        num_parallel_blocks = _tpu_parallel_blocks()
    # >= 2 grid steps only when that buys a second TensorCore (v7x); single-TC
    # parts run one step with all images sharing one lane axis.
    G = num_parallel_blocks if (num_parallel_blocks > 1
                                and N % num_parallel_blocks == 0) else 1
    npb = N // G          # images per grid step
    L = npb * HW          # lane extent per block

    # TODO(synk): QNN.quantize treated as identity (see header).
    # Lane-dense fused weight (Cout, 9*Cin) with column t*Cin + c, plus bias
    # folded in as a final column -> (Cout, 9*Cin + 1).
    w_fused = jnp.transpose(weight_oihw, (0, 2, 3, 1)).reshape(Cout, 9 * Cin)
    w_fused = jnp.concatenate([w_fused, bias.reshape(Cout, 1)], axis=1)

    # Activations: (G, Cin, npb*HW), channels on sublanes, pixels on lanes.
    if G == N:
        x_blocks = x_nchw.reshape(G, Cin, HW)                 # free reshape
    else:
        x_blocks = (x_nchw.reshape(G, npb, Cin, HW)
                    .transpose(0, 2, 1, 3)
                    .reshape(G, Cin, L))

    kernel = functools.partial(_conv3x3_kernel, img_w=W)

    out = pl.pallas_call(
        kernel,
        out_shape=jax.ShapeDtypeStruct((G, Cout, L), jnp.float32),
        grid_spec=pltpu.PrefetchScalarGridSpec(
            num_scalar_prefetch=0,
            grid=(G,),
            in_specs=[
                pl.BlockSpec((1, Cin, L), lambda g: (g, 0, 0)),
                pl.BlockSpec((Cout, 9 * Cin + 1), lambda g: (0, 0)),
            ],
            out_specs=pl.BlockSpec((1, Cout, L), lambda g: (g, 0, 0)),
        ),
        compiler_params=pltpu.CompilerParams(
            dimension_semantics=("parallel",)),
    )(x_blocks, w_fused)

    # Unpack and keep only the valid conv outputs (top-left OHxOW per plane).
    if G == N:
        out_nchw = out.reshape(N, Cout, H, W)
    else:
        out_nchw = (out.reshape(G, Cout, npb, H, W)
                    .transpose(0, 2, 1, 3, 4)
                    .reshape(N, Cout, H, W))
    return out_nchw[:, :, :OH, :OW]


def _reference(x_nchw, weight_oihw, bias):
    """Pure-JAX reference matching the PyTorch forward."""
    xc = jnp.clip(x_nchw, 0.0, 255.0)
    y = jax.lax.conv_general_dilated(
        xc, weight_oihw, window_strides=(1, 1), padding="VALID",
        dimension_numbers=("NCHW", "OIHW", "NCHW"))
    y = y + bias.reshape(1, -1, 1, 1)
    return jnp.clip(jnp.floor(y), 0.0, 255.0)


if __name__ == "__main__":
    # Module config: Conv2D_3x3(inChannels=4, outChannels=8)
    N, Cin, H, W = 2, 4, 16, 16
    Cout = 8

    key = jax.random.PRNGKey(0)
    kx, kw, kb = jax.random.split(key, 3)

    # kaiming_uniform_(a=sqrt(5)) on (Cout, Cin, 3, 3) -> bound = 1/sqrt(fan_in)
    fan_in = Cin * 3 * 3
    bound = 1.0 / math.sqrt(fan_in)

    # Quantize weights/bias to multiples of 1/256 and round inputs to integers:
    # every partial product and partial sum is then exactly representable
    # regardless of summation order or MXU pass decomposition, so the floor()-ed
    # comparison against the reference is exact (no +/-1 flakiness).
    weight = jax.random.uniform(kw, (Cout, Cin, 3, 3), jnp.float32,
                                minval=-bound, maxval=bound)
    weight = jnp.round(weight * 256.0) / 256.0
    bias = jax.random.uniform(kb, (Cout,), jnp.float32,
                              minval=-bound, maxval=bound)
    bias = jnp.round(bias * 256.0) / 256.0

    # Integer inputs spanning beyond [0, 255] so both clamps are exercised.
    x = jnp.round(jax.random.uniform(kx, (N, Cin, H, W), jnp.float32,
                                     minval=-50.0, maxval=300.0))

    out = jax.block_until_ready(conv2d_3x3_pallas(x, weight, bias))
    ref = _reference(x, weight, bias)

    assert out.shape == (N, Cout, H - 2, W - 2)
    assert jnp.array_equal(out, ref), "mismatch vs reference"
    print("KERNEL_OK")
</pallas_src>

<mosaic_0001>
module attributes {stable_mosaic.version = 11 : i64} {
  func.func @_conv3x3_kernel(%arg0: i32, %arg1: memref<1x4x512xf32, #tpu.memory_space<vmem>>, %arg2: memref<8x37xf32, #tpu.memory_space<vmem>>, %arg3: memref<1x8x512xf32, #tpu.memory_space<vmem>>) attributes {dimension_semantics = [#tpu.dimension_semantics<parallel>], iteration_bounds = array<i64: 1>, scalar_prefetch = 0 : i64, scratch_operands = 0 : i64, tpu.core_type = #tpu.core_type<tc>, window_params = [{transform_indices = @transform_0, window_bounds = array<i64: 1, 4, 512>}, {pipeline_mode = #tpu.pipeline_mode<synchronous>, transform_indices = @transform_1, window_bounds = array<i64: 8, 37>}, {transform_indices = @transform_2, window_bounds = array<i64: 1, 8, 512>}]} {
    %c0 = arith.constant 0 : index
    %c0_0 = arith.constant 0 : index
    %c0_1 = arith.constant 0 : index
    %0 = vector.load %arg1[%c0, %c0_0, %c0_1] : memref<1x4x512xf32, #tpu.memory_space<vmem>>, vector<1x4x512xf32>
    %1 = vector.shape_cast %0 : vector<1x4x512xf32> to vector<4x512xf32>
    %cst = arith.constant 0.000000e+00 : f32
    %cst_2 = arith.constant 2.550000e+02 : f32
    %2 = vector.broadcast %cst : f32 to vector<4x512xf32>
    %3 = arith.maximumf %2, %1 : vector<4x512xf32>
    %4 = vector.broadcast %cst_2 : f32 to vector<4x512xf32>
    %5 = arith.minimumf %4, %3 : vector<4x512xf32>
    %c511_i32 = arith.constant 511 : i32
    %6 = tpu.dynamic_rotate %5 by %c511_i32 dim 1 : vector<4x512xf32>, i32 -> vector<4x512xf32>
    %c510_i32 = arith.constant 510 : i32
    %7 = tpu.dynamic_rotate %5 by %c510_i32 dim 1 : vector<4x512xf32>, i32 -> vector<4x512xf32>
    %c496_i32 = arith.constant 496 : i32
    %8 = tpu.dynamic_rotate %5 by %c496_i32 dim 1 : vector<4x512xf32>, i32 -> vector<4x512xf32>
    %c495_i32 = arith.constant 495 : i32
    %9 = tpu.dynamic_rotate %5 by %c495_i32 dim 1 : vector<4x512xf32>, i32 -> vector<4x512xf32>
    %c494_i32 = arith.constant 494 : i32
    %10 = tpu.dynamic_rotate %5 by %c494_i32 dim 1 : vector<4x512xf32>, i32 -> vector<4x512xf32>
    %c480_i32 = arith.constant 480 : i32
    %11 = tpu.dynamic_rotate %5 by %c480_i32 dim 1 : vector<4x512xf32>, i32 -> vector<4x512xf32>
    %c479_i32 = arith.constant 479 : i32
    %12 = tpu.dynamic_rotate %5 by %c479_i32 dim 1 : vector<4x512xf32>, i32 -> vector<4x512xf32>
    %c478_i32 = arith.constant 478 : i32
    %13 = tpu.dynamic_rotate %5 by %c478_i32 dim 1 : vector<4x512xf32>, i32 -> vector<4x512xf32>
    %cst_3 = arith.constant 1.000000e+00 : f32
    %14 = vector.broadcast %cst_3 : f32 to vector<1x512xf32>
    %15 = tpu.concatenate %5, %6, %7, %8, %9, %10, %11, %12, %13, %14 in 0 : vector<4x512xf32>, vector<4x512xf32>, vector<4x512xf32>, vector<4x512xf32>, vector<4x512xf32>, vector<4x512xf32>, vector<4x512xf32>, vector<4x512xf32>, vector<4x512xf32>, vector<1x512xf32> -> vector<37x512xf32>
    %c0_4 = arith.constant 0 : index
    %c0_5 = arith.constant 0 : index
    %16 = vector.load %arg2[%c0_4, %c0_5] : memref<8x37xf32, #tpu.memory_space<vmem>>, vector<8x37xf32>
    %cst_6 = arith.constant dense<0.000000e+00> : vector<8x512xf32>
    %17 = tpu.matmul %16, %15, %cst_6 {dimension_numbers = #tpu.dot_dimension_numbers<[1], [0], [0], [1], [0, 0, 1, 1], [], []>} : vector<8x37xf32>, vector<37x512xf32>, vector<8x512xf32> -> vector<8x512xf32>
    %18 = math.floor %17 : vector<8x512xf32>
    %cst_7 = arith.constant 0.000000e+00 : f32
    %cst_8 = arith.constant 2.550000e+02 : f32
    %19 = vector.broadcast %cst_7 : f32 to vector<8x512xf32>
    %20 = arith.maximumf %19, %18 : vector<8x512xf32>
    %21 = vector.broadcast %cst_8 : f32 to vector<8x512xf32>
    %22 = arith.minimumf %21, %20 : vector<8x512xf32>
    %c0_9 = arith.constant 0 : index
    %c0_10 = arith.constant 0 : index
    %c0_11 = arith.constant 0 : index
    %23 = vector.load %arg3[%c0_9, %c0_10, %c0_11] : memref<1x8x512xf32, #tpu.memory_space<vmem>>, vector<1x8x512xf32>
    %24 = vector.shape_cast %23 : vector<1x8x512xf32> to vector<8x512xf32>
    %25 = vector.shape_cast %22 : vector<8x512xf32> to vector<1x8x512xf32>
    tpu.vector_store %arg3[%c0_9, %c0_10, %c0_11], %25 {strides = array<i32>} : memref<1x8x512xf32, #tpu.memory_space<vmem>>, vector<1x8x512xf32>,
    return
  }
  func.func @transform_0(%arg0: i32) -> (i32, i32, i32) {
    %c0_i32 = arith.constant 0 : i32
    %c0_i32_0 = arith.constant 0 : i32
    %c0_i32_1 = arith.constant 0 : i32
    return %arg0, %c0_i32, %c0_i32_0 : i32, i32, i32
  }
  func.func @transform_1(%arg0: i32) -> (i32, i32) {
    %c0_i32 = arith.constant 0 : i32
    %c0_i32_0 = arith.constant 0 : i32
    %c0_i32_1 = arith.constant 0 : i32
    return %c0_i32, %c0_i32_0 : i32, i32
  }
  func.func @transform_2(%arg0: i32) -> (i32, i32, i32) {
    %c0_i32 = arith.constant 0 : i32
    %c0_i32_0 = arith.constant 0 : i32
    %c0_i32_1 = arith.constant 0 : i32
    return %arg0, %c0_i32, %c0_i32_0 : i32, i32, i32
  }
}

</mosaic_0001>

<bundles_post_ra>
// kernel: tpu_custom_call.1
= control target key start
LH: loop header
LB: loop body
LE: loop exit
PB: predicated region body
PF: predicated region fallthrough
CT: control target
= control target key end

     0   :  { %7 = vsyncpa [#allocation3], 0  ;;  %s831_s0 = inlined_call_operand.hbm [shape: f32[1,4,512], index: 0, kind: input, shape index: {}]   ;;  %s832_s1 = inlined_call_operand.hbm [shape: f32[8,37], index: 1, kind: input, shape index: {}]   ;;  %s833_s2 = inlined_call_operand.hbm [shape: f32[1,8,512], index: 2, kind: output, shape index: {}]  }
   0x1   :  { %8 = vsyncpa [#allocation6], 0 }
   0x2   :  { %9 = vsyncpa [#allocation4], 0  ;;  %s15_s11 = sshll.u32 %s831_s0, 4  ;;  %s611_s12 = smov [#allocation2]   ;;  %s16_s11 = int_to_ptr.hbm [resolvable:$true] %s15_s11 }
   0x3   :  { %s17_s13 = sshll.u32 %s611_s12, 4  ;;  %s26_s16 = sshll.u32 %s832_s1, 4  ;;  %s18_s13 = int_to_ptr.vmem [resolvable:$true] %s17_s13  ;;  %s27_s16 = int_to_ptr.hbm [resolvable:$true] %s26_s16 }
   0x4   :  { %20 = dma.hbm_to_vmem [thread:$0]  %s16_s11, 256, %s18_s13, [#allocation3]  }
   0x5   :  { %s612_s17 = smov [#allocation5]  }
   0x6   :  { %s28_s18 = sshll.u32 %s612_s17, 4  ;;  %s29_s18 = int_to_ptr.vmem [resolvable:$true] %s28_s18 }
   0x7   :  { %31 = dma.hbm_to_vmem [thread:$0]  %s27_s16, 128, %s29_s18, [#allocation6]  }
   0x8   :  { %605 = dma.done.wait [#allocation3], 256  }
   0x9   :  { %606 = vsyncadd [#allocation3], 4294967040 }
   0xa   :  { %607 = dma.done.wait [#allocation6], 128  }
   0xb   :  { %608 = vsyncadd [#allocation6], 4294967168  ;;  %v40_v0 = vld [vmem:[#allocation2] sm:$0xff]  ;;  %v41_v1 = vld [vmem:[#allocation2 + $0x8] sm:$0xff]  ;;  %s613_s0 = smov 127   ;;  %s614_s1 = smov 112   ;;  %v67_v58 = vlaneseq }
   0xc   :  { %v42_v2 = vmax.f32 %v40_v0, 0.0  ;;  %v43_v3 = vmax.f32 %v41_v1, 0.0  ;;  %s615_s19 = smov 111   ;;  %s616_s20 = smov 110   ;;  %vm301_vm1 = vcmask 1043456   ;;  %vm327_vm5 = vcmask 1044480  }
   0xd   :  { %s617_s21 = smov 96   ;;  %s618_s22 = smov 95   ;;  %v695_v61 = vand.u32 127, %v67_v58  ;;  %vm323_vm10 = vcmask 302080  }
   0xe   :  { %v643_v4 = vmin.f32 %v42_v2, 255.0  ;;  %v645_v5 = vmin.f32 %v43_v3, 255.0  ;;  %s619_s23 = smov 94   ;;  %s620_s24 = smov 126  }
   0xf   :  { %vm69_vm0 = vcmp.lt.s32.totalorder %v695_v61, 127  ;;  %vm165_vm2 = vcmp.lt.s32.totalorder %v695_v61, 110  ;;  %vm237_vm3 = vcmp.lt.s32.totalorder %v695_v61, 94  ;;  %vm141_vm4 = vcmp.lt.s32.totalorder %v695_v61, 111  ;;  %s621_s25 = smov [#allocation7]   ;;  %s443_s29 = sshll.u32 %s833_s2, 4  ;;  %s444_s29 = int_to_ptr.hbm [resolvable:$true] %s443_s29 }
  0x10   :  { %48 = vst [vmem:[#allocation1] ss:$2 sm:$0xff] %v643_v4  ;;  %vm189_vm6 = vcmp.lt.s32.totalorder %v695_v61, 96  ;;  %vm117_vm7 = vcmp.lt.s32.totalorder %v695_v61, 112  ;;  %vm213_vm8 = vcmp.lt.s32.totalorder %v695_v61, 95  ;;  %vm93_vm9 = vcmp.lt.s32.totalorder %v695_v61, 126 }
  0x11   :  { %50 = vst [vmem:[#allocation1 + $0x10] ss:$2 sm:$0xff] %v645_v5  ;;  %s441_s26 = sshll.u32 %s621_s25, 4  ;;  %s442_s26 = int_to_ptr.vmem [resolvable:$true] %s441_s26 }
  0x17   :  { %v51_v6 = vld.sshfl [vmem:[#allocation1] sm:$0xff pattern:$0x75316420]  ;;  %v649_v7 = vld.sshfl [vmem:[#allocation1 + $0x8] sm:$0xff pattern:$0x75316420] }
  0x18   :  { %v53_v8 = vld.sshfl [vmem:[#allocation1 + $0x10] sm:$0xff pattern:$0x75316420]  ;;  %v54_v9 = vld.sshfl [vmem:[#allocation1 + $0x18] sm:$0xff pattern:$0x75316420] }
  0x19   :  { %74 = vst [vmem:[#allocation1] ss:$2 sm:$0xff] %v643_v4  ;;  %v473_v10 = vpack.i.bf16 %v53_v8, %v51_v6  ;;  %65 = vrot.lane.b32.xlu2 %v54_v9, %s613_s0 }
  0x1a   :  { %76 = vst [vmem:[#allocation1 + $0x10] ss:$2 sm:$0xff] %v645_v5 }
  0x1b   :  { %474 = vrot.lane.b32.xlu1 %v473_v10, %s613_s0 }
  0x20   :  { %v655_v11 = vld.sshfl [vmem:[#allocation1] sm:$0xff pattern:$0x75316420]  ;;  %v657_v12 = vld.sshfl [vmem:[#allocation1 + $0x8] sm:$0xff pattern:$0x75316420] }
  0x21   :  { %v659_v13 = vld.sshfl [vmem:[#allocation1 + $0x10] sm:$0xff pattern:$0x75316420]  ;;  %v661_v14 = vld.sshfl [vmem:[#allocation1 + $0x18] sm:$0xff pattern:$0x75316420] }
  0x22   :  { %98 = vst [vmem:[#allocation1] ss:$2 sm:$0xff] %v643_v4  ;;  %v528_v49 = vpack.i.bf16 %v659_v13, %v655_v11 }
  0x23   :  { %100 = vst [vmem:[#allocation1 + $0x10] ss:$2 sm:$0xff] %v645_v5 }
  0x29   :  { %v101_v15 = vld.sshfl [vmem:[#allocation1] sm:$0xff pattern:$0x75316420]  ;;  %v102_v16 = vld.sshfl [vmem:[#allocation1 + $0x8] sm:$0xff pattern:$0x75316420] }
  0x2a   :  { %v103_v17 = vld.sshfl [vmem:[#allocation1 + $0x10] sm:$0xff pattern:$0x75316420]  ;;  %v104_v18 = vld.sshfl [vmem:[#allocation1 + $0x18] sm:$0xff pattern:$0x75316420] }
  0x2b   :  { %124 = vst [vmem:[#allocation1 + $0x10] ss:$2 sm:$0xff] %v645_v5  ;;  %v478_v19 = vpack.i.bf16 %v103_v17, %v101_v15  ;;  %v483_v20 = vpack.i.bf16 %v102_v16, %v104_v18 }
  0x2c   :  { %122 = vst [vmem:[#allocation1] ss:$2 sm:$0xff] %v643_v4 }
  0x2d   :  { %479 = vrot.lane.b32.xlu0 %v478_v19, %s614_s1  ;;  %484 = vrot.lane.b32.xlu1 %v483_v20, %s614_s1 }
  0x32   :  { %v127_v21 = vld.sshfl [vmem:[#allocation1 + $0x10] sm:$0xff pattern:$0x75316420]  ;;  %v128_v22 = vld.sshfl [vmem:[#allocation1 + $0x18] sm:$0xff pattern:$0x75316420] }
  0x33   :  { %v125_v23 = vld.sshfl [vmem:[#allocation1] sm:$0xff pattern:$0x75316420]  ;;  %v126_v24 = vld.sshfl [vmem:[#allocation1 + $0x8] sm:$0xff pattern:$0x75316420] }
  0x34   :  { %v493_v25 = vpack.i.bf16 %v126_v24, %v128_v22  ;;  %146 = vst [vmem:[#allocation1] ss:$2 sm:$0xff] %v643_v4  ;;  %v488_v26 = vpack.i.bf16 %v127_v21, %v125_v23 }
  0x35   :  { %148 = vst [vmem:[#allocation1 + $0x10] ss:$2 sm:$0xff] %v645_v5 }
  0x36   :  { %494 = vrot.lane.b32.xlu0 %v493_v25, %s615_s19  ;;  %489 = vrot.lane.b32.xlu2 %v488_v26, %s615_s19 }
  0x3b   :  { %v150_v27 = vld.sshfl [vmem:[#allocation1 + $0x8] sm:$0xff pattern:$0x75316420]  ;;  %v149_v28 = vld.sshfl [vmem:[#allocation1] sm:$0xff pattern:$0x75316420] }
  0x3c   :  { %v151_v29 = vld.sshfl [vmem:[#allocation1 + $0x10] sm:$0xff pattern:$0x75316420]  ;;  %v152_v30 = vld.sshfl [vmem:[#allocation1 + $0x18] sm:$0xff pattern:$0x75316420] }
  0x3d   :  { %v503_v31 = vpack.i.bf16 %v150_v27, %v152_v30  ;;  %170 = vst [vmem:[#allocation1] ss:$2 sm:$0xff] %v643_v4  ;;  %v498_v32 = vpack.i.bf16 %v151_v29, %v149_v28 }
  0x3e   :  { %172 = vst [vmem:[#allocation1 + $0x10] ss:$2 sm:$0xff] %v645_v5 }
  0x3f   :  { %504 = vrot.lane.b32.xlu0 %v503_v31, %s616_s20  ;;  %499 = vrot.lane.b32.xlu2 %v498_v32, %s616_s20 }
  0x44   :  { %v173_v33 = vld.sshfl [vmem:[#allocation1] sm:$0xff pattern:$0x75316420]  ;;  %v174_v34 = vld.sshfl [vmem:[#allocation1 + $0x8] sm:$0xff pattern:$0x75316420] }
  0x45   :  { %v175_v35 = vld.sshfl [vmem:[#allocation1 + $0x10] sm:$0xff pattern:$0x75316420]  ;;  %v176_v36 = vld.sshfl [vmem:[#allocation1 + $0x18] sm:$0xff pattern:$0x75316420] }
  0x46   :  { %v508_v37 = vpack.i.bf16 %v175_v35, %v173_v33  ;;  %194 = vst [vmem:[#allocation1] ss:$2 sm:$0xff] %v643_v4  ;;  %v513_v38 = vpack.i.bf16 %v174_v34, %v176_v36 }
  0x47   :  { %196 = vst [vmem:[#allocation1 + $0x10] ss:$2 sm:$0xff] %v645_v5 }
  0x48   :  { %509 = vrot.lane.b32.xlu1 %v508_v37, %s617_s21  ;;  %514 = vrot.lane.b32.xlu2 %v513_v38, %s617_s21 }
  0x4d   :  { %v197_v39 = vld.sshfl [vmem:[#allocation1] sm:$0xff pattern:$0x75316420]  ;;  %v198_v40 = vld.sshfl [vmem:[#allocation1 + $0x8] sm:$0xff pattern:$0x75316420] }
  0x4e   :  { %v199_v41 = vld.sshfl [vmem:[#allocation1 + $0x10] sm:$0xff pattern:$0x75316420]  ;;  %218 = vst [vmem:[#allocation1] ss:$2 sm:$0xff] %v643_v4 }
  0x4f   :  { %v518_v42 = vpack.i.bf16 %v199_v41, %v197_v39  ;;  %v200_v43 = vld.sshfl [vmem:[#allocation1 + $0x18] sm:$0xff pattern:$0x75316420] }
  0x50   :  { %220 = vst [vmem:[#allocation1 + $0x10] ss:$2 sm:$0xff] %v645_v5  ;;  %v523_v45 = vpack.i.bf16 %v198_v40, %v200_v43 }
  0x51   :  { %519 = vrot.lane.b32.xlu0 %v518_v42, %s618_s22 }
  0x55   :  { %v221_v44 = vld.sshfl [vmem:[#allocation1] sm:$0xff pattern:$0x75316420]  ;;  %v222_v46 = vld.sshfl [vmem:[#allocation1 + $0x8] sm:$0xff pattern:$0x75316420] }
  0x56   :  { %229 = vrot.lane.b32.xlu1 %v221_v44, %s619_s23  ;;  %242 = vst [vmem:[#allocation1] ss:$2 sm:$0xff] %v643_v4 }
  0x57   :  { %v223_v47 = vld.sshfl [vmem:[#allocation1 + $0x10] sm:$0xff pattern:$0x75316420]  ;;  %v224_v48 = vld.sshfl [vmem:[#allocation1 + $0x18] sm:$0xff pattern:$0x75316420] }
  0x58   :  { %235 = vrot.lane.b32.xlu2 %v224_v48, %s619_s23  ;;  %244 = vst [vmem:[#allocation1 + $0x10] ss:$2 sm:$0xff] %v645_v5 }
  0x59   :  { %524 = vrot.lane.b32.xlu0 %v523_v45, %s618_s22 }
  0x5e   :  { %233 = vrot.lane.b32.xlu1 %v223_v47, %s619_s23 }
  0x60   :  { %231 = vrot.lane.b32.xlu2 %v222_v46, %s619_s23 }
  0x61   :  { %529 = vrot.lane.b32.xlu0 %v528_v49, %s620_s24 }
  0x66   :  { %91 = vrot.lane.b32.xlu1 %v661_v14, %s620_s24 }
  0x69   :  { %61 = vrot.lane.b32.xlu0 %v649_v7, %s613_s0 }
  0x6e   :  { %87 = vrot.lane.b32.xlu1 %v657_v12, %s620_s24 }
  0x73   :  { %v683_v50 = vpop.permute.xlu2 %65 }
  0x8d   :  { %v687_v54 = vpop.permute.xlu1 %474 }
  0x8e   :  { %v477_v63 = vunpack.i.h.bf16 %v687_v54  ;;  %v476_v0 = vunpack.i.l.bf16 %v687_v54 }
  0x90   :  { %v490_v51 = vpop.permute.xlu2 %489  ;;  %v707_v4 = vsel %vm69_vm0, %v477_v63, %v683_v50 }
  0x91   :  { %v492_v2 = vunpack.i.h.bf16 %v490_v51  ;;  %v491_v3 = vunpack.i.l.bf16 %v490_v51 }
  0x99   :  { %v500_v53 = vpop.permute.xlu2 %499 }
  0x9a   :  { %v501_v7 = vunpack.i.l.bf16 %v500_v53  ;;  %v502_v14 = vunpack.i.h.bf16 %v500_v53 }
  0x9f   :  { %v685_v52 = vpop.permute.xlu0 %479  ;;  %v691_v57 = vpop.permute.xlu1 %484 }
  0xa0   :  { %v482_v11 = vunpack.i.h.bf16 %v685_v52  ;;  %v481_v12 = vunpack.i.l.bf16 %v685_v52  ;;  %v486_v13 = vunpack.i.l.bf16 %v691_v57  ;;  %v246_v52 = vld.sshfl [vmem:[#allocation1 + $0x8] sm:$0xff pattern:$0x75316420] }
  0xa2   :  { %v689_v56 = vpop.permute.xlu2 %514 }
  0xa3   :  { %v517_v15 = vunpack.i.h.bf16 %v689_v56  ;;  %v516_v16 = vunpack.i.l.bf16 %v689_v56 }
  0xa8   :  { %v495_v55 = vpop.permute.xlu0 %494 }
  0xa9   :  { %v497_v5 = vunpack.i.h.bf16 %v495_v55  ;;  %v496_v6 = vunpack.i.l.bf16 %v495_v55 }
  0xab   :  { %v144_v20 = vsel %vm141_vm4, %v491_v3, %v497_v5  ;;  %v145_v21 = vsel %vm141_vm4, %v496_v6, %v491_v3  ;;  %v143_v28 = vsel %vm141_vm4, %v497_v5, %v492_v2  ;;  %v142_v36 = vsel %vm141_vm4, %v492_v2, %v496_v6 }
  0xb1   :  { %v505_v59 = vpop.permute.xlu0 %504 }
  0xb2   :  { %v693_v60 = vpop.permute.xlu2 %235  ;;  %v507_v8 = vunpack.i.h.bf16 %v505_v59  ;;  %v506_v9 = vunpack.i.l.bf16 %v505_v59 }
  0xb4   :  { %v168_v24 = vsel %vm165_vm2, %v501_v7, %v507_v8  ;;  %v169_v25 = vsel %vm165_vm2, %v506_v9, %v501_v7  ;;  %v167_v29 = vsel %vm165_vm2, %v507_v8, %v502_v14  ;;  %v166_v37 = vsel %vm165_vm2, %v502_v14, %v506_v9 }
  0xb5   :  { %v281_v34 = vrot.slane %v168_v24, 4  ;;  %v284_v35 = vrot.slane %v169_v25, 4  ;;  %v282_v45 = vrot.slane %v167_v29, 4  ;;  %v283_v2 = vrot.slane %v166_v37, 4 }
  0xb6   :  { %v73_v9 = vsel %vm69_vm0, %v683_v50, %v476_v0  ;;  %v247_v25 = vld.sshfl [vmem:[#allocation1 + $0x10] sm:$0xff pattern:$0x75316420] }
  0xb7   :  { %v310_v59 = vsel %vm301_vm1, %v144_v20, %v281_v34  ;;  %v313_v5 = vsel %vm301_vm1, %v145_v21, %v284_v35  ;;  %v311_v50 = vsel %vm301_vm1, %v143_v28, %v282_v45 }
  0xba   :  { %v697_v62 = vpop.permute.xlu1 %509  ;;  %v232_v10 = vpop.permute.xlu2 %231 }
  0xbb   :  { %v511_v26 = vunpack.i.l.bf16 %v697_v62  ;;  %v512_v42 = vunpack.i.h.bf16 %v697_v62 }
  0xbd   :  { %v192_v47 = vsel %vm189_vm6, %v511_v26, %v517_v15  ;;  %v193_v48 = vsel %vm189_vm6, %v516_v16, %v511_v26  ;;  %v191_v6 = vsel %vm189_vm6, %v517_v15, %v512_v42  ;;  %v118_v15 = vsel %vm117_vm7, %v482_v11, %v486_v13  ;;  %v248_v26 = vld.sshfl [vmem:[#allocation1 + $0x18] sm:$0xff pattern:$0x75316420] }
  0xbe   :  { %v271_v21 = vrot.slane %v118_v15, 4 }
  0xc3   :  { %v520_v1 = vpop.permute.xlu0 %519 }
  0xc4   :  { %v522_v30 = vunpack.i.h.bf16 %v520_v1  ;;  %v521_v31 = vunpack.i.l.bf16 %v520_v1 }
  0xc8   :  { %v230_v17 = vpop.permute.xlu1 %229 }
  0xc9   :  { %v240_v18 = vsel %vm237_vm3, %v230_v17, %v232_v10  ;;  %v241_v19 = vsel %vm237_vm3, %v693_v60, %v230_v17  ;;  %v312_v17 = vsel %vm301_vm1, %v142_v36, %v283_v2 }
  0xca   :  { %v318_v22 = vsel %vm301_vm1, %v240_v18, 1.0  ;;  %v321_v23 = vsel %vm301_vm1, %v241_v19, 1.0  ;;  %v259_v18 = vrot.slane %v707_v4, 4  ;;  %v487_v19 = vunpack.i.h.bf16 %v691_v57  ;;  %v322_v57 = vld [vmem:[#allocation5] sm:$0xff] }
  0xcb   :  { %v525_v27 = vpop.permute.xlu0 %524  ;;  %454 = vmatpush.msk.msra.mxu0 %vm327_vm5, %v318_v22  ;;  %460 = vmatpush.msk.msra.mxu3 %vm327_vm5, %v321_v23  ;;  %v260_v23 = vrot.slane %v73_v9, 4 }
  0xcc   :  { %v527_v32 = vunpack.i.h.bf16 %v525_v27  ;;  %v526_v33 = vunpack.i.l.bf16 %v525_v27  ;;  %v304_v4 = vsel %vm301_vm1, %v247_v25, %v259_v18  ;;  %v119_v34 = vsel %vm117_vm7, %v487_v19, %v482_v11 }
  0xcd   :  { %v270_v37 = vrot.slane %v119_v34, 4 }
  0xce   :  { %v216_v38 = vsel %vm213_vm8, %v521_v31, %v527_v32  ;;  %v217_v39 = vsel %vm213_vm8, %v526_v33, %v521_v31  ;;  %v215_v40 = vsel %vm213_vm8, %v527_v32, %v522_v30  ;;  %v214_v41 = vsel %vm213_vm8, %v522_v30, %v526_v33 }
  0xcf   :  { %v293_v43 = vrot.slane %v216_v38, 4  ;;  %v296_v44 = vrot.slane %v217_v39, 4  ;;  %v294_v49 = vrot.slane %v215_v40, 4  ;;  %v295_v51 = vrot.slane %v214_v41, 4 }
  0xd0   :  { %v234_v46 = vpop.permute.xlu1 %233  ;;  %v305_v30 = vsel %vm301_vm1, %v248_v26, %v260_v23  ;;  %v120_v31 = vsel %vm117_vm7, %v481_v12, %v487_v19  ;;  %v245_v38 = vld.sshfl [vmem:[#allocation1] sm:$0xff pattern:$0x75316420] }
  0xd1   :  { %v314_v53 = vsel %vm301_vm1, %v192_v47, %v293_v43  ;;  %v317_v55 = vsel %vm301_vm1, %v193_v48, %v296_v44  ;;  %v239_v56 = vsel %vm237_vm3, %v232_v10, %v234_v46  ;;  %v238_v58 = vsel %vm237_vm3, %v234_v46, %v693_v60 }
  0xd2   :  { %352 = vmatpush.msra.mxu0 %v314_v53  ;;  %412 = vmatpush.msra.mxu3 %v317_v55  ;;  %v319_v62 = vsel %vm301_vm1, %v239_v56, 1.0  ;;  %v320_v1 = vsel %vm301_vm1, %v238_v58, 1.0  ;;  %v190_v60 = vsel %vm189_vm6, %v512_v42, %v516_v16  ;;  %v315_v7 = vsel %vm301_vm1, %v191_v6, %v294_v49 }
  0xd3   :  { %v530_v3 = vpop.permute.xlu0 %529  ;;  %456 = vmatpush.msk.msra.mxu1 %vm327_vm5, %v319_v62  ;;  %458 = vmatpush.msk.msra.mxu2 %vm327_vm5, %v320_v1  ;;  %v316_v8 = vsel %vm301_vm1, %v190_v60, %v295_v51  ;;  %v121_v16 = vsel %vm117_vm7, %v486_v13, %v481_v12 }
  0xd4   :  { %353 = vmatpush.msra.mxu0 %v310_v59  ;;  %413 = vmatpush.msra.mxu3 %v313_v5  ;;  %v532_v10 = vunpack.i.h.bf16 %v530_v3  ;;  %v531_v14 = vunpack.i.l.bf16 %v530_v3  ;;  %v272_v22 = vrot.slane %v121_v16, 4 }
  0xd5   :  { %372 = vmatpush.msra.mxu1 %v315_v7  ;;  %392 = vmatpush.msra.mxu2 %v316_v8 }
  0xd7   :  { %373 = vmatpush.msra.mxu1 %v311_v50  ;;  %393 = vmatpush.msra.mxu2 %v312_v17 }
  0xd8   :  { %v92_v20 = vpop.permute.xlu1 %91 }
  0xd9   :  { %v94_v24 = vsel %vm93_vm9, %v532_v10, %v92_v20  ;;  %v97_v13 = vsel %vm93_vm9, %v92_v20, %v531_v14 }
  0xda   :  { %v308_v27 = vsel %vm301_vm1, %v94_v24, %v271_v21  ;;  %v309_v28 = vsel %vm301_vm1, %v97_v13, %v272_v22 }
  0xdb   :  { %v62_v29 = vpop.permute.xlu0 %61  ;;  %394 = vmatpush.msra.mxu2 %v308_v27  ;;  %414 = vmatpush.msra.mxu3 %v309_v28 }
  0xdc   :  { %v71_v32 = vsel %vm69_vm0, %v62_v29, %v477_v63  ;;  %v72_v33 = vsel %vm69_vm0, %v476_v0, %v62_v29  ;;  %v269_v63 = vrot.slane %v120_v31, 4 }
  0xdd   :  { %395 = vmatpush.msra.mxu2 %v304_v4  ;;  %415 = vmatpush.msra.mxu3 %v305_v30  ;;  %v257_v12 = vrot.slane %v72_v33, 4  ;;  %v258_v35 = vrot.slane %v71_v32, 4 }
  0xde   :  { %459 = vmatmul.msk.f32.vlgmr.msra.gmra.mxu2 %vm323_vm10, %v322_v57  ;;  %461 = vmatmul.msk.f32.vlgmr.msra.gmra.mxu3 %vm323_vm10, %v322_v57 }
  0xdf   :  { %v302_v40 = vsel %vm301_vm1, %v245_v38, %v257_v12  ;;  %v303_v41 = vsel %vm301_vm1, %v246_v52, %v258_v35 }
  0xe0   :  { %v88_v36 = vpop.permute.xlu1 %87 }
  0xe1   :  { %v95_v54 = vsel %vm93_vm9, %v88_v36, %v532_v10  ;;  %v96_v0 = vsel %vm93_vm9, %v531_v14, %v88_v36 }
  0xe2   :  { %v306_v39 = vsel %vm301_vm1, %v96_v0, %v269_v63  ;;  %v307_v11 = vsel %vm301_vm1, %v95_v54, %v270_v37 }
  0xe3   :  { %354 = vmatpush.msra.mxu0 %v306_v39  ;;  %374 = vmatpush.msra.mxu1 %v307_v11 }
  0xe5   :  { %355 = vmatpush.msra.mxu0 %v302_v40  ;;  %375 = vmatpush.msra.mxu1 %v303_v41 }
  0xe6   :  { %455 = vmatmul.msk.f32.vlgmr.msra.gmra.mxu0 %vm323_vm10, %v322_v57  ;;  %457 = vmatmul.msk.f32.vlgmr.msra.gmra.mxu1 %vm323_vm10, %v322_v57 }
 0x161   :  { %v397_v61 = vpop.f32.mrf.mxu2  ;;  %v417_v42 = vpop.f32.mrf.mxu3 }
 0x162   :  { %v422_v43 = vfloor.f32 %v397_v61  ;;  %v423_v44 = vfloor.f32 %v417_v42 }
 0x163   :  { %v357_v45 = vpop.f32.mrf.mxu0  ;;  %v377_v46 = vpop.f32.mrf.mxu1 }
 0x164   :  { %v420_v47 = vfloor.f32 %v357_v45  ;;  %v421_v48 = vfloor.f32 %v377_v46  ;;  %v426_v49 = vmax.f32 %v422_v43, 0.0  ;;  %v427_v51 = vmax.f32 %v423_v44, 0.0 }
 0x166   :  { %v424_v53 = vmax.f32 %v420_v47, 0.0  ;;  %v425_v55 = vmax.f32 %v421_v48, 0.0  ;;  %v430_v56 = vmin.f32 %v426_v49, 255.0  ;;  %v431_v58 = vmin.f32 %v427_v51, 255.0 }
 0x168   :  { %v428_v59 = vmin.f32 %v424_v53, 255.0  ;;  %v429_v62 = vmin.f32 %v425_v55, 255.0  ;;  %434 = vst [vmem:[#allocation7 + $0x10] sm:$0xff] %v430_v56 }
 0x169   :  { %435 = vst [vmem:[#allocation7 + $0x18] sm:$0xff] %v431_v58 }
 0x16a   :  { %432 = vst [vmem:[#allocation7] sm:$0xff] %v428_v59 }
 0x16b   :  { %433 = vst [vmem:[#allocation7 + $0x8] sm:$0xff] %v429_v62 }
 0x16c   :  { %446 = dma.vmem_to_hbm [thread:$0]  %s442_s26, 512, %s444_s29, [#allocation4]  }
 0x16d   :  { %609 = dma.done.wait [#allocation4], 512  }
 0x16e   :  { %610 = vsyncadd [#allocation4], 4294966784 }
 0x16f   :  { %451 = vsyncpa [#allocation3], 1 }
 0x170   :  { %452 = vsyncpa [#allocation6], 1 }
 0x171   :  { %453 = vsyncpa [#allocation4], 1 }

</bundles_post_ra>
